<compile_context>
chip_gen: v7x
topology: tpu7x:2x2x1
jax: 0.10.0
libtpu: 0.0.40
codegen_flags: <defaults>
</compile_context>

<pallas_src>
import functools

import jax
import jax.numpy as jnp
from jax.experimental import pallas as pl
from jax.experimental.pallas import tpu as pltpu

OBS_SPACE = 4      # CartPole-v0 observation dim
ACT_SPACE = 2      # CartPole-v0 action dim
H1, H2 = 64, 32
N_PAD = 128        # lane-dense output width (>= ACT_SPACE, multiple of 128)
TM_MAX = 1024      # batch tile: large enough to amortize ~0.35 us/step overhead


def mlp_kernel(x_ref, w1_ref, b1_ref, w2_ref, b2_ref, w3_ref, b3_ref, o_ref):
    # Layer 1: bf16 MXU matmul, f32 accumulation; bias + ReLU on the VPU in f32.
    h1 = jnp.dot(x_ref[...], w1_ref[...], preferred_element_type=jnp.float32)
    h1 = jnp.maximum(h1 + b1_ref[...], 0.0)
    # Layer 2: Linear + ReLU
    h2 = jnp.dot(h1.astype(jnp.bfloat16), w2_ref[...],
                 preferred_element_type=jnp.float32)
    h2 = jnp.maximum(h2 + b2_ref[...], 0.0)
    # Layer 3: Linear (no activation), padded to 128 lanes for an unmasked store.
    out = jnp.dot(h2.astype(jnp.bfloat16), w3_ref[...],
                  preferred_element_type=jnp.float32)
    o_ref[...] = (out + b3_ref[...]).astype(o_ref.dtype)


def _round_up(a, m):
    return (a + m - 1) // m * m


def mlp_forward(x, params):
    """x: (batch, OBS_SPACE) f32; params from init_params. Returns (batch, ACT_SPACE) f32."""
    w1, b1, w2, b2, w3, b3 = params
    batch = x.shape[0]

    # bf16 operands for the MXU (halves DMA bytes); biases / accum stay f32.
    xb = x.astype(jnp.bfloat16)
    w1b = w1.astype(jnp.bfloat16)
    w2b = w2.astype(jnp.bfloat16)
    # Lane-dense final layer: pad 2 -> 128 output columns with zeros.
    w3p = jnp.zeros((H2, N_PAD), jnp.bfloat16).at[:, :ACT_SPACE].set(
        w3.astype(jnp.bfloat16))
    b3p = jnp.zeros((1, N_PAD), jnp.float32).at[:, :ACT_SPACE].set(b3)

    # Batch tile: big for large batches, padded-to-8 single tile for small ones.
    tm = TM_MAX if batch >= TM_MAX else _round_up(batch, 8)
    padded = _round_up(batch, tm)
    if padded != batch:
        xb = jnp.pad(xb, ((0, padded - batch), (0, 0)))
    grid_m = padded // tm

    const2d = lambda i: (0, 0)   # weights/biases: same block every step -> VMEM resident

    out = pl.pallas_call(
        mlp_kernel,
        out_shape=jax.ShapeDtypeStruct((padded, N_PAD), jnp.float32),
        grid_spec=pltpu.PrefetchScalarGridSpec(
            num_scalar_prefetch=0,
            grid=(grid_m,),
            in_specs=[
                pl.BlockSpec((tm, OBS_SPACE), lambda i: (i, 0)),   # activations pipeline
                pl.BlockSpec(w1b.shape, const2d),
                pl.BlockSpec(b1.shape, const2d),
                pl.BlockSpec(w2b.shape, const2d),
                pl.BlockSpec(b2.shape, const2d),
                pl.BlockSpec(w3p.shape, const2d),
                pl.BlockSpec(b3p.shape, const2d),
            ],
            out_specs=pl.BlockSpec((tm, N_PAD), lambda i: (i, 0)),
        ),
        compiler_params=pltpu.CompilerParams(
            dimension_semantics=("parallel",),   # megacore sharding on v7x
        ),
    )(xb, w1b, b1, w2b, b2, w3p, b3p)

    return out[:batch, :ACT_SPACE]


def init_params(key):
    """Deterministic init mirroring nn.Linear default (U(-1/sqrt(in), 1/sqrt(in)))."""
    def linear(key, fan_in, fan_out):
        kw, kb = jax.random.split(key)
        bound = 1.0 / jnp.sqrt(fan_in)
        # stored transposed: (in, out) so the kernel computes y = x @ W + b
        w = jax.random.uniform(kw, (fan_in, fan_out), jnp.float32, -bound, bound)
        b = jax.random.uniform(kb, (1, fan_out), jnp.float32, -bound, bound)
        return w, b

    k1, k2, k3 = jax.random.split(key, 3)
    w1, b1 = linear(k1, OBS_SPACE, H1)
    w2, b2 = linear(k2, H1, H2)
    w3, b3 = linear(k3, H2, ACT_SPACE)
    return (w1, b1, w2, b2, w3, b3)


def ref_forward_f32(x, params):
    w1, b1, w2, b2, w3, b3 = params
    h = jnp.maximum(x @ w1 + b1, 0.0)
    h = jnp.maximum(h @ w2 + b2, 0.0)
    return h @ w3 + b3


def ref_forward_bf16(x, params):
    """Precision-matched reference (bf16 MXU operands, f32 accumulation)."""
    w1, b1, w2, b2, w3, b3 = params
    bf = jnp.bfloat16
    h = jnp.dot(x.astype(bf), w1.astype(bf), preferred_element_type=jnp.float32)
    h = jnp.maximum(h + b1, 0.0)
    h = jnp.dot(h.astype(bf), w2.astype(bf), preferred_element_type=jnp.float32)
    h = jnp.maximum(h + b2, 0.0)
    h = jnp.dot(h.astype(bf), w3.astype(bf), preferred_element_type=jnp.float32)
    return h + b3


if __name__ == "__main__":
    key = jax.random.PRNGKey(0)
    k_params, k_x1, k_x2 = jax.random.split(key, 3)

    params = init_params(k_params)
    fwd = jax.jit(mlp_forward)

    # Small-shape check (matches the per-step DQN call: batch=2, obs=4).
    x_small = jax.random.normal(k_x1, (2, OBS_SPACE), jnp.float32)
    out_small = fwd(x_small, params)
    jax.block_until_ready(out_small)
    assert out_small.shape == (2, ACT_SPACE)
    assert jnp.allclose(out_small, ref_forward_bf16(x_small, params),
                        atol=1e-3, rtol=1e-3)
    assert jnp.allclose(out_small, ref_forward_f32(x_small, params),
                        atol=5e-2, rtol=5e-2)

    # Larger batch exercises the tiled/padded/pipelined path (2000 -> 2 tiles of 1024).
    x_big = jax.random.normal(k_x2, (2000, OBS_SPACE), jnp.float32)
    out_big = fwd(x_big, params)
    jax.block_until_ready(out_big)
    assert out_big.shape == (2000, ACT_SPACE)
    assert jnp.allclose(out_big, ref_forward_bf16(x_big, params),
                        atol=1e-3, rtol=1e-3)
    assert jnp.allclose(out_big, ref_forward_f32(x_big, params),
                        atol=1e-1, rtol=5e-2)

    print("KERNEL_OK")
</pallas_src>

<mosaic_0001>
module attributes {stable_mosaic.version = 11 : i64} {
  func.func @mlp_kernel(%arg0: i32, %arg1: memref<8x4xbf16, #tpu.memory_space<vmem>>, %arg2: memref<4x64xbf16, #tpu.memory_space<vmem>>, %arg3: memref<1x64xf32, #tpu.memory_space<vmem>>, %arg4: memref<64x32xbf16, #tpu.memory_space<vmem>>, %arg5: memref<1x32xf32, #tpu.memory_space<vmem>>, %arg6: memref<32x128xbf16, #tpu.memory_space<vmem>>, %arg7: memref<1x128xf32, #tpu.memory_space<vmem>>, %arg8: memref<8x128xf32, #tpu.memory_space<vmem>>) attributes {dimension_semantics = [#tpu.dimension_semantics<parallel>], iteration_bounds = array<i64: 1>, scalar_prefetch = 0 : i64, scratch_operands = 0 : i64, tpu.core_type = #tpu.core_type<tc>, window_params = [{transform_indices = @transform_0, window_bounds = array<i64: 8, 4>}, {pipeline_mode = #tpu.pipeline_mode<synchronous>, transform_indices = @transform_1, window_bounds = array<i64: 4, 64>}, {pipeline_mode = #tpu.pipeline_mode<synchronous>, transform_indices = @transform_2, window_bounds = array<i64: 1, 64>}, {pipeline_mode = #tpu.pipeline_mode<synchronous>, transform_indices = @transform_3, window_bounds = array<i64: 64, 32>}, {pipeline_mode = #tpu.pipeline_mode<synchronous>, transform_indices = @transform_4, window_bounds = array<i64: 1, 32>}, {pipeline_mode = #tpu.pipeline_mode<synchronous>, transform_indices = @transform_5, window_bounds = array<i64: 32, 128>}, {pipeline_mode = #tpu.pipeline_mode<synchronous>, transform_indices = @transform_6, window_bounds = array<i64: 1, 128>}, {transform_indices = @transform_7, window_bounds = array<i64: 8, 128>}]} {
    %c0 = arith.constant 0 : index
    %c0_0 = arith.constant 0 : index
    %0 = vector.load %arg1[%c0, %c0_0] : memref<8x4xbf16, #tpu.memory_space<vmem>>, vector<8x4xbf16>
    %c0_1 = arith.constant 0 : index
    %c0_2 = arith.constant 0 : index
    %1 = vector.load %arg2[%c0_1, %c0_2] : memref<4x64xbf16, #tpu.memory_space<vmem>>, vector<4x64xbf16>
    %cst = arith.constant dense<0.000000e+00> : vector<8x64xf32>
    %2 = tpu.matmul %0, %1, %cst {dimension_numbers = #tpu.dot_dimension_numbers<[1], [0], [0], [1], [0, 0, 1, 1], [], []>} : vector<8x4xbf16>, vector<4x64xbf16>, vector<8x64xf32> -> vector<8x64xf32>
    %c0_3 = arith.constant 0 : index
    %c0_4 = arith.constant 0 : index
    %3 = vector.load %arg3[%c0_3, %c0_4] : memref<1x64xf32, #tpu.memory_space<vmem>>, vector<1x64xf32>
    %4 = vector.broadcast %3 : vector<1x64xf32> to vector<8x64xf32>
    %5 = arith.addf %2, %4 : vector<8x64xf32>
    %cst_5 = arith.constant 0.000000e+00 : f32
    %6 = vector.broadcast %cst_5 : f32 to vector<8x64xf32>
    %7 = arith.maximumf %5, %6 : vector<8x64xf32>
    %8 = arith.truncf %7 : vector<8x64xf32> to vector<8x64xbf16>
    %c0_6 = arith.constant 0 : index
    %c0_7 = arith.constant 0 : index
    %9 = vector.load %arg4[%c0_6, %c0_7] : memref<64x32xbf16, #tpu.memory_space<vmem>>, vector<64x32xbf16>
    %cst_8 = arith.constant dense<0.000000e+00> : vector<8x32xf32>
    %10 = tpu.matmul %8, %9, %cst_8 {dimension_numbers = #tpu.dot_dimension_numbers<[1], [0], [0], [1], [0, 0, 1, 1], [], []>} : vector<8x64xbf16>, vector<64x32xbf16>, vector<8x32xf32> -> vector<8x32xf32>
    %c0_9 = arith.constant 0 : index
    %c0_10 = arith.constant 0 : index
    %11 = vector.load %arg5[%c0_9, %c0_10] : memref<1x32xf32, #tpu.memory_space<vmem>>, vector<1x32xf32>
    %12 = vector.broadcast %11 : vector<1x32xf32> to vector<8x32xf32>
    %13 = arith.addf %10, %12 : vector<8x32xf32>
    %cst_11 = arith.constant 0.000000e+00 : f32
    %14 = vector.broadcast %cst_11 : f32 to vector<8x32xf32>
    %15 = arith.maximumf %13, %14 : vector<8x32xf32>
    %16 = arith.truncf %15 : vector<8x32xf32> to vector<8x32xbf16>
    %c0_12 = arith.constant 0 : index
    %c0_13 = arith.constant 0 : index
    %17 = vector.load %arg6[%c0_12, %c0_13] : memref<32x128xbf16, #tpu.memory_space<vmem>>, vector<32x128xbf16>
    %cst_14 = arith.constant dense<0.000000e+00> : vector<8x128xf32>
    %18 = tpu.matmul %16, %17, %cst_14 {dimension_numbers = #tpu.dot_dimension_numbers<[1], [0], [0], [1], [0, 0, 1, 1], [], []>} : vector<8x32xbf16>, vector<32x128xbf16>, vector<8x128xf32> -> vector<8x128xf32>
    %c0_15 = arith.constant 0 : index
    %c0_16 = arith.constant 0 : index
    %19 = vector.load %arg7[%c0_15, %c0_16] : memref<1x128xf32, #tpu.memory_space<vmem>>, vector<1x128xf32>
    %20 = vector.broadcast %19 : vector<1x128xf32> to vector<8x128xf32>
    %21 = arith.addf %18, %20 : vector<8x128xf32>
    %c0_17 = arith.constant 0 : index
    %c0_18 = arith.constant 0 : index
    %22 = vector.load %arg8[%c0_17, %c0_18] : memref<8x128xf32, #tpu.memory_space<vmem>>, vector<8x128xf32>
    tpu.vector_store %arg8[%c0_17, %c0_18], %21 {strides = array<i32>} : memref<8x128xf32, #tpu.memory_space<vmem>>, vector<8x128xf32>,
    return
  }
  func.func @transform_0(%arg0: i32) -> (i32, i32) {
    %c0_i32 = arith.constant 0 : i32
    %c0_i32_0 = arith.constant 0 : i32
    return %arg0, %c0_i32 : i32, i32
  }
  func.func @transform_1(%arg0: i32) -> (i32, i32) {
    %c0_i32 = arith.constant 0 : i32
    %c0_i32_0 = arith.constant 0 : i32
    %c0_i32_1 = arith.constant 0 : i32
    return %c0_i32, %c0_i32_0 : i32, i32
  }
  func.func @transform_2(%arg0: i32) -> (i32, i32) {
    %c0_i32 = arith.constant 0 : i32
    %c0_i32_0 = arith.constant 0 : i32
    %c0_i32_1 = arith.constant 0 : i32
    return %c0_i32, %c0_i32_0 : i32, i32
  }
  func.func @transform_3(%arg0: i32) -> (i32, i32) {
    %c0_i32 = arith.constant 0 : i32
    %c0_i32_0 = arith.constant 0 : i32
    %c0_i32_1 = arith.constant 0 : i32
    return %c0_i32, %c0_i32_0 : i32, i32
  }
  func.func @transform_4(%arg0: i32) -> (i32, i32) {
    %c0_i32 = arith.constant 0 : i32
    %c0_i32_0 = arith.constant 0 : i32
    %c0_i32_1 = arith.constant 0 : i32
    return %c0_i32, %c0_i32_0 : i32, i32
  }
  func.func @transform_5(%arg0: i32) -> (i32, i32) {
    %c0_i32 = arith.constant 0 : i32
    %c0_i32_0 = arith.constant 0 : i32
    %c0_i32_1 = arith.constant 0 : i32
    return %c0_i32, %c0_i32_0 : i32, i32
  }
  func.func @transform_6(%arg0: i32) -> (i32, i32) {
    %c0_i32 = arith.constant 0 : i32
    %c0_i32_0 = arith.constant 0 : i32
    %c0_i32_1 = arith.constant 0 : i32
    return %c0_i32, %c0_i32_0 : i32, i32
  }
  func.func @transform_7(%arg0: i32) -> (i32, i32) {
    %c0_i32 = arith.constant 0 : i32
    %c0_i32_0 = arith.constant 0 : i32
    return %arg0, %c0_i32 : i32, i32
  }
}

</mosaic_0001>

<bundles_post_ra>
// kernel: mlp_forward.1
= control target key start
LH: loop header
LB: loop body
LE: loop exit
PB: predicated region body
PF: predicated region fallthrough
CT: control target
= control target key end

     0   :  { %vm40_vm0 = vcmask 1041408   ;;  %v299_v0 = vmov 0.0   ;;  %vm300_vm1 = vmmov 0   ;;  %vm36_vm2 = vcmask 31744   ;;  %s377_s1 = inlined_call_operand.vmem [shape: bf16[4,64], index: 1, kind: input, shape index: {}]   ;;  %s378_s0 = inlined_call_operand.vmem [shape: bf16[8,4], index: 0, kind: input, shape index: {}]   ;;  %s379_s3 = inlined_call_operand.vmem [shape: bf16[64,32], index: 3, kind: input, shape index: {}]   ;;  %s380_s5 = inlined_call_operand.vmem [shape: bf16[32,128], index: 5, kind: input, shape index: {}]   ;;  %s381_s2 = inlined_call_operand.vmem [shape: f32[1,64], index: 2, kind: input, shape index: {}]   ;;  %s382_s4 = inlined_call_operand.vmem [shape: f32[1,32], index: 4, kind: input, shape index: {}]   ;;  %s383_s6 = inlined_call_operand.vmem [shape: f32[1,128], index: 6, kind: input, shape index: {}]   ;;  %s384_s7 = inlined_call_operand.vmem [shape: f32[8,128], index: 7, kind: output, shape index: {}]  }
   0x1   :  { %265 = vmatprep.subr.bf16.mxu0 %v299_v0  ;;  %v28_v1 = vld [vmem:[%s377_s1] sm:$0x3]  ;;  %267 = vmatprep.mubr.msk.bf16.mxu0 %vm300_vm1, %v299_v0  ;;  %v294_v5 = vld [vmem:[%s379_s3 + $0x8] sm:$0xff]   ;;  %v295_v6 = vld [vmem:[%s379_s3 + $0x10] sm:$0xff]   ;;  %vm125_vm3 = vcmask 523264   ;;  %vm194_vm4 = vcmask 261120  }
   0x2   :  { %v42_v2 = vsel %vm40_vm0, %v28_v1, 0  ;;  %271 = vmatprep.subr.bf16.mxu1 %v299_v0  ;;  %v293_v3 = vld [vmem:[%s379_s3] sm:$0xff]   ;;  %279 = vmatprep.mubr.msk.bf16.mxu1 %vm300_vm1, %v299_v0  ;;  %v296_v7 = vld [vmem:[%s379_s3 + $0x18] sm:$0xff]   ;;  %v298_v17 = vld [vmem:[%s380_s5 + $0x8] sm:$0xff]  }
   0x3   :  { %266 = vmatpush3.bf16.msra.mxu0 %v42_v2  ;;  %v27_v4 = vld [vmem:[%s378_s0] sm:$0xf]  ;;  %272 = vmatpush3.bf16.msra.mxu1 %v293_v3 }
   0x4   :  { %283 = vmatprep.subr.bf16.mxu0 %v299_v0  ;;  %273 = vmatprep.subr.bf16.mxu1 %v299_v0  ;;  %v297_v8 = vld [vmem:[%s380_s5] sm:$0xff]  }
   0x5   :  { %v243_v9 = vld [vmem:[%s381_s2] ss:$0 sm:$0xff] }
   0x6   :  { %268 = vmatmul.mubr.msk.bf16.vlgmr.msra.gmra.mrb[0].mxu0 %vm36_vm2, %v27_v4  ;;  %v245_v18 = vld [vmem:[%s382_s4] ss:$0 sm:$0xff] }
   0x7   :  { %287 = vmatprep.mubr.msk.bf16.mxu0 %vm300_vm1, %v299_v0  ;;  %274 = vmatpush3.bf16.msra.mxu1 %v294_v5  ;;  %v251_v26 = vld [vmem:[%s383_s6] ss:$0 sm:$0xff] }
   0x8   :  { %275 = vmatprep.subr.bf16.mxu1 %v299_v0  ;;  %284 = vmatpush3.bf16.msra.mxu0 %v297_v8 }
   0x9   :  { %285 = vmatprep.subr.bf16.mxu0 %v299_v0 }
   0xb   :  { %276 = vmatpush3.bf16.msra.mxu1 %v295_v6 }
   0xc   :  { %277 = vmatprep.subr.bf16.mxu1 %v299_v0  ;;  %286 = vmatpush3.bf16.msra.mxu0 %v298_v17 }
   0xf   :  { %278 = vmatpush3.bf16.msra.mxu1 %v296_v7 }
  0xd9   :  { %v78_v10 = vpop.f32.mrb[0].mxu0 }
  0xda   :  { %v79_v11 = vadd.f32 %v243_v9, %v78_v10  ;;  %v269_v12 = vpop.f32.mrb[1].mxu0 }
  0xdb   :  { %v81_v13 = vpop.f32.mrb[2].mxu0 }
  0xdc   :  { %v84_v14 = vmax.f32 %v79_v11, 0.0  ;;  %v270_v15 = vpop.f32.mrb[3].mxu0 }
  0xde   :  { %v85_v16 = vpack.c.bf16 %v84_v14, %v84_v14 }
  0xe0   :  { %280 = vmatmul.mubr.msk.bf16.vlgmr.msra.gmra.mrb[0].mxu1 %vm125_vm3, %v85_v16 }
 0x1b3   :  { %v163_v19 = vpop.f32.mrb[0].mxu1 }
 0x1b4   :  { %v164_v20 = vadd.f32 %v245_v18, %v163_v19  ;;  %v281_v21 = vpop.f32.mrb[1].mxu1 }
 0x1b5   :  { %v166_v22 = vpop.f32.mrb[2].mxu1 }
 0x1b6   :  { %v169_v23 = vmax.f32 %v164_v20, 0.0  ;;  %v282_v24 = vpop.f32.mrb[3].mxu1 }
 0x1b8   :  { %v170_v25 = vpack.c.bf16 %v169_v23, %v169_v23 }
 0x1ba   :  { %288 = vmatmul.mubr.msk.bf16.vlgmr.msra.gmra.mrb[4].mxu0 %vm194_vm4, %v170_v25 }
 0x28d   :  { %v232_v27 = vpop.f32.mrb[4].mxu0 }
 0x28e   :  { %v233_v28 = vadd.f32 %v251_v26, %v232_v27  ;;  %v289_v29 = vpop.f32.mrb[5].mxu0 }
 0x28f   :  { %v235_v30 = vpop.f32.mrb[6].mxu0 }
 0x290   :  { %238 = vst [vmem:[%s384_s7] sm:$0xff] %v233_v28  ;;  %v290_v31 = vpop.f32.mrb[7].mxu0 }

</bundles_post_ra>
